<compile_context>
chip_gen: v5e
topology: v5e:2x2
jax: 0.10.0
libtpu: 0.0.40
codegen_flags: <defaults>
</compile_context>

<pallas_src>
import math

import jax
import jax.numpy as jnp
from jax.experimental import pallas as pl
from jax.experimental.pallas import tpu as pltpu


def _mu_kernel(w_ref, o_ref):
    # w_ref: (cols_tile, rows_tile)  tile of the nn.Linear weight (init_dim, n_objects)
    # o_ref: (rows_tile, cols_tile)  tile of the transposed output (n_objects, init_dim)
    # Single XLU transpose per tile; VALU/EUP untouched, kernel is DMA-bound.
    o_ref[...] = w_ref[...].T


def _round_down(x: int, m: int) -> int:
    return (x // m) * m


def _tile_for_axis(dim: int, desired: int) -> int:
    """Largest multiple-of-128 tile <= min(desired, dim), or the full dim."""
    if dim <= 128:
        return dim
    return max(128, _round_down(min(desired, dim), 128))


def _target_block_bytes() -> int:
    # v7x HBM BW (~3.2 TB/s) shrinks per-block DMA time ~2.3x vs v6e while the
    # per-grid-step overhead stays fixed, so use bigger blocks there.
    try:
        kind = jax.devices()[0].device_kind.lower()
    except Exception:  # pragma: no cover - defensive only
        kind = ""
    return (8 << 20) if "v7" in kind else (4 << 20)


def _choose_tiles(init_dim: int, n_objects: int, itemsize: int,
                  target_block_bytes: int) -> tuple:
    elems = max(128 * 128, target_block_bytes // max(itemsize, 1))
    # cols_tile tiles init_dim (the lane dim of the *output*): keep >= 512
    # when possible for long contiguous write bursts.
    side = max(512, _round_down(int(math.isqrt(elems)), 128))
    cols_tile = _tile_for_axis(init_dim, side)
    # rows_tile tiles n_objects (the lane dim of the *input*): fill the rest
    # of the block budget -> long contiguous read bursts.
    rows_tile = _tile_for_axis(n_objects, max(128, elems // max(cols_tile, 1)))

    # Megacore (v7x has 2 TensorCores): keep >= 2 parallel grid steps when the
    # problem is big enough to split.
    if pl.cdiv(n_objects, rows_tile) * pl.cdiv(init_dim, cols_tile) < 2:
        if rows_tile >= 256:
            rows_tile = _round_down(rows_tile // 2, 128) or rows_tile
        elif cols_tile >= 256:
            cols_tile = _round_down(cols_tile // 2, 128) or cols_tile
    return rows_tile, cols_tile


def _validate_user_tile(tile: int, dim: int) -> int:
    """Round a user-supplied tile to a legal value (multiple of 128 or full dim)."""
    tile = min(int(tile), dim)
    if tile >= dim or dim <= 128:
        return dim if tile >= dim else (dim if dim <= 128 else 128)
    return max(128, _round_down(tile, 128))


def mu_forward_pallas(weight: jax.Array, *, rows_tile=None, cols_tile=None) -> jax.Array:
    """weight: (init_dim, n_objects) -> weight.T: (n_objects, init_dim)."""
    init_dim, n_objects = weight.shape
    itemsize = jnp.dtype(weight.dtype).itemsize

    auto_rows, auto_cols = _choose_tiles(init_dim, n_objects, itemsize,
                                         _target_block_bytes())
    rows_tile = auto_rows if rows_tile is None else _validate_user_tile(rows_tile, n_objects)
    cols_tile = auto_cols if cols_tile is None else _validate_user_tile(cols_tile, init_dim)

    grid = (pl.cdiv(n_objects, rows_tile), pl.cdiv(init_dim, cols_tile))

    # Double-buffered in + out working set = 4 x block bytes; leave headroom,
    # and never exceed ~48 MiB (v7x has only 64 MiB physical VMEM per TC).
    block_bytes = rows_tile * cols_tile * itemsize
    vmem_limit = int(min(48 << 20, max(32 << 20, 4 * block_bytes + (2 << 20))))

    return pl.pallas_call(
        _mu_kernel,
        out_shape=jax.ShapeDtypeStruct((n_objects, init_dim), weight.dtype),
        grid=grid,
        in_specs=[pl.BlockSpec((cols_tile, rows_tile), lambda i, j: (j, i))],
        out_specs=pl.BlockSpec((rows_tile, cols_tile), lambda i, j: (i, j)),
        compiler_params=pltpu.CompilerParams(
            dimension_semantics=("parallel", "parallel"),
            vmem_limit_bytes=vmem_limit,
        ),
        cost_estimate=pl.CostEstimate(
            flops=0,
            transcendentals=0,
            bytes_accessed=2 * weight.size * itemsize,
        ),
    )(weight)


# Below this many elements, pallas_call launch + DMA overhead dwarfs the work
# and a custom call blocks XLA from fusing the transpose into consumers.
_PALLAS_MIN_ELEMS = 128 * 1024


def mu_forward(weight: jax.Array) -> jax.Array:
    """Module forward: returns mu.weight.T.

    Preferred: don't materialize the transpose at all when the consumer is a
    matmul (fold it into dot_general dimension_numbers -- the MXU takes the
    transposed operand for free).  The Pallas path is used only when a large
    transposed matrix genuinely has to be written back to HBM.
    """
    if weight.size < _PALLAS_MIN_ELEMS:
        return weight.T  # tiny: let XLA fuse it into the downstream consumer
    return mu_forward_pallas(weight)


def init_mu_weight(key, n_objects: int, init_dim: int) -> jax.Array:
    """kaiming_normal_(mode='fan_out', nonlinearity='relu') on nn.Linear.weight
    of shape (init_dim, n_objects): fan_out = init_dim, gain = sqrt(2),
    i.e. N(0, 2/init_dim)."""
    std = jnp.sqrt(jnp.float32(2.0) / jnp.float32(init_dim))
    return std * jax.random.normal(key, (init_dim, n_objects), dtype=jnp.float32)


if __name__ == "__main__":
    key = jax.random.PRNGKey(0)

    # (1) Small single-block Pallas path.  init_dim = 128 keeps the output
    # last dim lane-dense.
    n_objects, init_dim = 16, 128
    w1 = init_mu_weight(key, n_objects, init_dim)            # (init_dim, n_objects)
    out1 = jax.block_until_ready(mu_forward_pallas(w1))
    assert out1.shape == (n_objects, init_dim), out1.shape
    assert jnp.array_equal(out1, w1.T), "mismatch vs reference (single-block)"

    # (2) 2-D tiled path with explicit tiles (grid 3x2, all blocks full).
    w2 = init_mu_weight(jax.random.PRNGKey(1), 384, 256)     # (256, 384)
    out2 = jax.block_until_ready(mu_forward_pallas(w2, rows_tile=128, cols_tile=128))
    assert out2.shape == (384, 256), out2.shape
    assert jnp.array_equal(out2, w2.T), "mismatch vs reference (2-D tiled)"

    # (3) Auto-tiled path with dims that are not multiples of 128
    # (exercises partial edge blocks / masked stores on the ragged edge).
    w3 = init_mu_weight(jax.random.PRNGKey(2), 200, 160)     # (160, 200)
    out3 = jax.block_until_ready(mu_forward_pallas(w3))
    assert out3.shape == (200, 160), out3.shape
    assert jnp.array_equal(out3, w3.T), "mismatch vs reference (ragged)"

    # (4) Dispatcher fast path (tiny sizes bypass Pallas entirely).
    out4 = jax.block_until_ready(mu_forward(w1))
    assert jnp.array_equal(out4, w1.T)

    print("KERNEL_OK")
</pallas_src>

<mosaic_0001>
module attributes {stable_mosaic.version = 11 : i64} {
  func.func @_mu_kernel(%arg0: i32, %arg1: i32, %arg2: memref<128x16xf32, #tpu.memory_space<vmem>>, %arg3: memref<16x128xf32, #tpu.memory_space<vmem>>) attributes {dimension_semantics = [#tpu.dimension_semantics<parallel>, #tpu.dimension_semantics<parallel>], iteration_bounds = array<i64: 1, 1>, scalar_prefetch = 0 : i64, scratch_operands = 0 : i64, tpu.core_type = #tpu.core_type<tc>, window_params = [{transform_indices = @transform_0, window_bounds = array<i64: 128, 16>}, {transform_indices = @transform_1, window_bounds = array<i64: 16, 128>}]} {
    %c0 = arith.constant 0 : index
    %c0_0 = arith.constant 0 : index
    %0 = vector.load %arg2[%c0, %c0_0] : memref<128x16xf32, #tpu.memory_space<vmem>>, vector<128x16xf32>
    %1 = tpu.transpose %0, [1, 0] : vector<128x16xf32> -> vector<16x128xf32>
    %c0_1 = arith.constant 0 : index
    %c0_2 = arith.constant 0 : index
    %2 = vector.load %arg3[%c0_1, %c0_2] : memref<16x128xf32, #tpu.memory_space<vmem>>, vector<16x128xf32>
    tpu.vector_store %arg3[%c0_1, %c0_2], %1 {strides = array<i32>} : memref<16x128xf32, #tpu.memory_space<vmem>>, vector<16x128xf32>,
    return
  }
  func.func @transform_0(%arg0: i32, %arg1: i32) -> (i32, i32) {
    %c0_i32 = arith.constant 0 : i32
    return %arg1, %arg0 : i32, i32
  }
  func.func @transform_1(%arg0: i32, %arg1: i32) -> (i32, i32) {
    %c0_i32 = arith.constant 0 : i32
    return %arg0, %arg1 : i32, i32
  }
}

</mosaic_0001>

<bundles_post_ra>
// kernel: tpu_custom_call.1
= control target key start
LH: loop header
LB: loop body
LE: loop exit
PB: predicated region body
PF: predicated region fallthrough
CT: control target
= control target key end

     0   :  { %s170_s0 = inlined_call_operand.vmem [shape: f32[128,16], index: 0, kind: input, shape index: {}]   ;;  %s171_s1 = inlined_call_operand.hbm [shape: f32[16,128], index: 1, kind: output, shape index: {}]  }
   0x1   :  { %v9_v0 = vld [vmem:[%s170_s0] sm:$0xff] }
   0x2   :  { %25 = vxpose.xlu0.b32.start [1/16] (narrow) %v9_v0, 16 }
   0x3   :  { %6 = vsyncpa [#allocation3], 0  ;;  %v10_v1 = vld [vmem:[%s170_s0 + $0x8] sm:$0xff]  ;;  %v11_v2 = vld [vmem:[%s170_s0 + $0x10] sm:$0xff]  ;;  %s106_s9 = smov [#allocation2]   ;;  %s65_s13 = sshll.u32 %s171_s1, 4  ;;  %s66_s13 = int_to_ptr.hbm [resolvable:$true] %s65_s13 }
   0x4   :  { %v12_v3 = vld [vmem:[%s170_s0 + $0x18] sm:$0xff]  ;;  %v13_v4 = vld [vmem:[%s170_s0 + $0x20] sm:$0xff]  ;;  %v14_v5 = vld [vmem:[%s170_s0 + $0x28] sm:$0xff]  ;;  %s63_s10 = sshll.u32 %s106_s9, 4  ;;  %s107_s14 = smov 128   ;;  %s64_s10 = int_to_ptr.vmem [resolvable:$true] %s63_s10 }
   0x5   :  { %v15_v6 = vld [vmem:[%s170_s0 + $0x30] sm:$0xff]  ;;  %v16_v7 = vld [vmem:[%s170_s0 + $0x38] sm:$0xff]  ;;  %v17_v8 = vld [vmem:[%s170_s0 + $0x40] sm:$0xff]  ;;  %s108_s15 = smov 8  }
   0x6   :  { %v18_v9 = vld [vmem:[%s170_s0 + $0x48] sm:$0xff]  ;;  %v19_v10 = vld [vmem:[%s170_s0 + $0x50] sm:$0xff]  ;;  %v20_v11 = vld [vmem:[%s170_s0 + $0x58] sm:$0xff] }
   0x7   :  { %v21_v12 = vld [vmem:[%s170_s0 + $0x60] sm:$0xff]  ;;  %v22_v13 = vld [vmem:[%s170_s0 + $0x68] sm:$0xff]  ;;  %v23_v14 = vld [vmem:[%s170_s0 + $0x70] sm:$0xff] }
   0x8   :  { %v24_v15 = vld [vmem:[%s170_s0 + $0x78] sm:$0xff] }
   0xa   :  { %26 = vxpose.xlu0.b32.cont [2/16] (narrow) %v10_v1, 16 }
  0x12   :  { %27 = vxpose.xlu0.b32.cont [3/16] (narrow) %v11_v2, 16 }
  0x1a   :  { %28 = vxpose.xlu0.b32.cont [4/16] (narrow) %v12_v3, 16 }
  0x22   :  { %29 = vxpose.xlu0.b32.cont [5/16] (narrow) %v13_v4, 16 }
  0x2a   :  { %30 = vxpose.xlu0.b32.cont [6/16] (narrow) %v14_v5, 16 }
  0x32   :  { %31 = vxpose.xlu0.b32.cont [7/16] (narrow) %v15_v6, 16 }
  0x3a   :  { %32 = vxpose.xlu0.b32.cont [8/16] (narrow) %v16_v7, 16 }
  0x42   :  { %33 = vxpose.xlu0.b32.cont [9/16] (narrow) %v17_v8, 16 }
  0x4a   :  { %34 = vxpose.xlu0.b32.cont [10/16] (narrow) %v18_v9, 16 }
  0x52   :  { %35 = vxpose.xlu0.b32.cont [11/16] (narrow) %v19_v10, 16 }
  0x5a   :  { %36 = vxpose.xlu0.b32.cont [12/16] (narrow) %v20_v11, 16 }
  0x62   :  { %37 = vxpose.xlu0.b32.cont [13/16] (narrow) %v21_v12, 16 }
  0x6a   :  { %38 = vxpose.xlu0.b32.cont [14/16] (narrow) %v22_v13, 16 }
  0x72   :  { %39 = vxpose.xlu0.b32.cont [15/16] (narrow) %v23_v14, 16 }
  0x7a   :  { %40 = vxpose.xlu0.b32.end [16/16] (narrow) %v24_v15, 16 }
  0xa6   :  { %v41_v16 = vpop.trf.xlu0 }
  0xa7   :  { %57 = vst [vmem:[#allocation2] sm:$0xff] %v41_v16 }
  0xae   :  { %v42_v17 = vpop.trf.xlu0 }
  0xaf   :  { %58 = vst [vmem:[#allocation2 + $0x8] sm:$0xff] %v42_v17 }
  0xb0   :  { %71 = dma.vmem_to_hbm [thread:$0]  %s64_s10, 256, %s66_s13, [#allocation3], %s107_s14, %s107_s14, %s108_s15  }
  0xb1   :  { %104 = dma.done.wait [#allocation3], 256  }
  0xb2   :  { %105 = vsyncadd [#allocation3], 4294967040 }
  0xb3   :  { %76 = vsyncpa [#allocation3], 1 }

</bundles_post_ra>
